<compile_context>
chip_gen: v7x
topology: tpu7x:2x2x1
jax: 0.10.0
libtpu: 0.0.40
codegen_flags: <defaults>
</compile_context>

<pallas_src>
import functools

import jax
import jax.numpy as jnp
from jax.experimental import pallas as pl
from jax.experimental.pallas import tpu as pltpu

_INV_SQRT2 = 0.7071067811865476


def _vmem_limit_bytes():
    """~3/4 of physical per-core VMEM: leaves headroom for compiler-internal
    scratch and double-buffered blocks (48 MiB on v7x, 96 MiB on v5e/v6e)."""
    try:
        cap = int(pltpu.get_tpu_info().vmem_capacity_bytes)
    except Exception:
        cap = 64 * 1024 * 1024
    return (cap * 3) // 4


def _pick_tile(dim, target, align):
    """Largest divisor of `dim` that is <= target and a multiple of `align`;
    falls back to the full dim (full-extent blocks are always legal)."""
    # TODO(synk): add a pad/remainder path instead of the full-dim fallback for
    # awkward shapes with no aligned divisor.
    if dim <= target:
        return dim
    cand = (target // align) * align
    while cand >= align:
        if dim % cand == 0:
            return cand
        cand -= align
    return dim


def _compiler_params(dim_sem, vmem_limit):
    return pltpu.CompilerParams(dimension_semantics=dim_sem,
                                vmem_limit_bytes=vmem_limit)


# ----------------------- 1. Fused QKV projection ----------------------------

def _qkv_kernel(x_ref, w_ref, b_ref, q_ref, k_ref, v_ref, acc_ref, *, d_model):
    kk = pl.program_id(1)

    @pl.when(kk == 0)
    def _init():
        acc_ref[...] = jnp.zeros_like(acc_ref)

    # bf16 MXU operands, f32 accumulation
    x = x_ref[...].astype(jnp.bfloat16)
    acc_ref[...] += jnp.dot(x, w_ref[...], preferred_element_type=jnp.float32)

    @pl.when(kk == pl.num_programs(1) - 1)
    def _finalize():
        z = acc_ref[...] + b_ref[...]
        q_ref[...] = z[:, :d_model]
        k_ref[...] = z[:, d_model:2 * d_model]
        v_ref[...] = z[:, 2 * d_model:]


def qkv_projection(x, wqkv_bf16, bqkv, *, d_model, vmem_limit):
    n, d_in = x.shape
    d3 = wqkv_bf16.shape[1]
    tm = _pick_tile(n, 512, 8)
    # Weight residency: with tk == d_in the weight index_map is constant across
    # all row tiles, so the whole bf16 weight is DMA'd once and stays in VMEM.
    resident = (d_in * d3 * 2                   # wqkv bf16 (single-buffered)
                + 2 * tm * d_in * 4             # x tile (double-buffered)
                + tm * d3 * 4                   # f32 accumulator
                + 2 * 3 * tm * d_model * 4)     # q/k/v out tiles (double-buffered)
    tk = d_in if resident <= (vmem_limit * 4) // 5 else _pick_tile(d_in, 512, 128)
    grid = (n // tm, d_in // tk)
    out_sds = jax.ShapeDtypeStruct((n, d_model), jnp.float32)
    o_spec = pl.BlockSpec((tm, d_model), lambda i, kk: (i, 0))
    return pl.pallas_call(
        functools.partial(_qkv_kernel, d_model=d_model),
        grid=grid,
        in_specs=[pl.BlockSpec((tm, tk), lambda i, kk: (i, kk)),
                  pl.BlockSpec((tk, d3), lambda i, kk: (kk, 0)),
                  pl.BlockSpec((1, d3), lambda i, kk: (0, 0))],
        out_specs=[o_spec, o_spec, o_spec],
        out_shape=(out_sds, out_sds, out_sds),
        scratch_shapes=[pltpu.VMEM((tm, d3), jnp.float32)],
        compiler_params=_compiler_params(("parallel", "arbitrary"), vmem_limit),
    )(x, wqkv_bf16, bqkv.reshape(1, -1))


# ------------- 2. Multi-head attention (flash-style over KV) ----------------

def _mha_kernel(q_ref, k_ref, v_ref, o_ref, m_sc, l_sc, acc_sc, *, nhead):
    kv = pl.program_id(2)

    @pl.when(kv == 0)
    def _init():
        m_sc[...] = jnp.full_like(m_sc, -jnp.inf)
        l_sc[...] = jnp.zeros_like(l_sc)
        acc_sc[...] = jnp.zeros_like(acc_sc)

    _, d = q_ref.shape
    hd = d // nhead

    # all heads packed along lanes; cast to bf16 at load for the MXU
    q_all = q_ref[...].astype(jnp.bfloat16)   # (tq,  D)
    k_all = k_ref[...].astype(jnp.bfloat16)   # (tkv, D)
    v_all = v_ref[...].astype(jnp.bfloat16)   # (tkv, D)

    # Statically unrolled loop over heads (small nhead).
    # TODO(synk): for nhead >= ~8 switch to lax.fori_loop with a pl.ds lane
    # slice (pl.multiple_of on the start) to bound vreg live ranges.
    # TODO(synk): when head_dim < 128 these lane slices are sub-lane-width
    # (masked stores); a (B, H, T, hd) layout with a head grid axis fixes that
    # once head_dim is a multiple of 128.
    for h in range(nhead):
        sl = slice(h * hd, (h + 1) * hd)
        qh = q_all[:, sl]                                 # (tq, hd)   scale pre-folded
        kh = k_all[:, sl]                                 # (tkv, hd)
        vh = v_all[:, sl]                                 # (tkv, hd)

        # contract on the last dims directly -- no transposed K operand materialized
        s = jax.lax.dot_general(qh, kh, (((1,), (1,)), ((), ())),
                                preferred_element_type=jnp.float32)   # (tq, tkv) f32

        m_prev = m_sc[h]                                  # (tq, 1)
        m_new = jnp.maximum(m_prev, jnp.max(s, axis=-1, keepdims=True))
        alpha = jnp.exp(m_prev - m_new)                   # f32 softmax math
        p = jnp.exp(s - m_new)

        l_sc[h] = alpha * l_sc[h] + jnp.sum(p, axis=-1, keepdims=True)
        acc_sc[:, sl] = alpha * acc_sc[:, sl] + jnp.dot(
            p.astype(jnp.bfloat16), vh, preferred_element_type=jnp.float32)
        m_sc[h] = m_new

    @pl.when(kv == pl.num_programs(2) - 1)
    def _finalize():
        # per-head lane-slice stores straight into the lane-dense output block
        # (no concatenate temporary / epilogue relayout)
        for h in range(nhead):
            sl = slice(h * hd, (h + 1) * hd)
            inv_l = pl.reciprocal(l_sc[h], approx=True)   # EUP slot, ~free
            o_ref[:, sl] = acc_sc[:, sl] * inv_l


def multihead_attention(q, k, v, *, nhead, seq_len, vmem_limit):
    n, d = q.shape
    batch = n // seq_len
    # query tiling bounds the q/o blocks + accumulator scratch and creates
    # extra parallel grid steps (v7x has 2 TensorCores per chip)
    tq = _pick_tile(seq_len, 512, 8)
    tkv = _pick_tile(seq_len, 512, 8)
    nq = seq_len // tq
    nkv = seq_len // tkv
    q_spec = pl.BlockSpec((tq, d), lambda b, qi, j: (b * nq + qi, 0))
    kv_spec = pl.BlockSpec((tkv, d), lambda b, qi, j: (b * nkv + j, 0))
    return pl.pallas_call(
        functools.partial(_mha_kernel, nhead=nhead),
        grid=(batch, nq, nkv),
        in_specs=[q_spec, kv_spec, kv_spec],
        out_specs=pl.BlockSpec((tq, d), lambda b, qi, j: (b * nq + qi, 0)),
        out_shape=jax.ShapeDtypeStruct((n, d), jnp.float32),
        scratch_shapes=[
            pltpu.VMEM((nhead, tq, 1), jnp.float32),   # running max
            pltpu.VMEM((nhead, tq, 1), jnp.float32),   # running denom
            pltpu.VMEM((tq, d), jnp.float32),          # running numerator (lane-dense)
        ],
        compiler_params=_compiler_params(("parallel", "parallel", "arbitrary"),
                                         vmem_limit),
    )(q, k, v)


# ----------- 3. Linear + bias + residual + LayerNorm (fused epilogue) -------

def _linear_res_ln_kernel(x_ref, w_ref, b_ref, res_ref, g_ref, beta_ref,
                          o_ref, acc_ref, *, eps):
    kk = pl.program_id(1)

    @pl.when(kk == 0)
    def _init():
        acc_ref[...] = jnp.zeros_like(acc_ref)

    x = x_ref[...].astype(jnp.bfloat16)
    acc_ref[...] += jnp.dot(x, w_ref[...], preferred_element_type=jnp.float32)

    @pl.when(kk == pl.num_programs(1) - 1)
    def _finalize():
        z = acc_ref[...] + b_ref[...] + res_ref[...]     # f32 epilogue
        mu = jnp.mean(z, axis=-1, keepdims=True)
        c = z - mu
        var = jnp.mean(c * c, axis=-1, keepdims=True)
        o_ref[...] = c * jax.lax.rsqrt(var + eps) * g_ref[...] + beta_ref[...]


def linear_residual_layernorm(x, w_bf16, bias, residual, gamma, beta, *,
                              eps, vmem_limit):
    n, k_dim = x.shape
    d_out = w_bf16.shape[1]
    tm = _pick_tile(n, 512, 8)
    resident = (k_dim * d_out * 2                # w bf16 (single-buffered)
                + 2 * tm * k_dim * 4             # x tile (double-buffered)
                + 2 * tm * d_out * 4             # residual tile (double-buffered)
                + tm * d_out * 4                 # acc
                + 2 * tm * d_out * 4)            # out tile (double-buffered)
    tk = k_dim if resident <= (vmem_limit * 4) // 5 else _pick_tile(k_dim, 512, 128)
    grid = (n // tm, k_dim // tk)
    row_spec = pl.BlockSpec((tm, d_out), lambda i, kk: (i, 0))
    vec_spec = pl.BlockSpec((1, d_out), lambda i, kk: (0, 0))
    return pl.pallas_call(
        functools.partial(_linear_res_ln_kernel, eps=eps),
        grid=grid,
        in_specs=[pl.BlockSpec((tm, tk), lambda i, kk: (i, kk)),
                  pl.BlockSpec((tk, d_out), lambda i, kk: (kk, 0)),
                  vec_spec, row_spec, vec_spec, vec_spec],
        out_specs=row_spec,
        out_shape=jax.ShapeDtypeStruct((n, d_out), jnp.float32),
        scratch_shapes=[pltpu.VMEM((tm, d_out), jnp.float32)],
        compiler_params=_compiler_params(("parallel", "arbitrary"), vmem_limit),
    )(x, w_bf16, bias.reshape(1, -1), residual,
      gamma.reshape(1, -1), beta.reshape(1, -1))


# ------ 4. Fused FFN: linear1 + GELU + linear2 + residual + LayerNorm -------

def _ffn_res_ln_kernel(x_ref, w1_ref, b1_ref, w2_ref, b2_ref, g_ref, beta_ref,
                       o_ref, acc_ref, *, eps):
    f = pl.program_id(1)

    @pl.when(f == 0)
    def _init():
        acc_ref[...] = jnp.zeros_like(acc_ref)

    xb = x_ref[...].astype(jnp.bfloat16)
    # (tm, tf) intermediate lives only in VMEM/vregs -- never written to HBM
    h = jnp.dot(xb, w1_ref[...], preferred_element_type=jnp.float32) + b1_ref[...]
    # exact erf-GELU in f32 (torch.nn.GELU default); VPU work hidden under MXU.
    # TODO(synk): tanh-approx GELU routes through the otherwise-idle EUP if the
    # accuracy budget allows (mainly matters on v5e).
    h = 0.5 * h * (1.0 + jax.lax.erf(h * _INV_SQRT2))
    acc_ref[...] += jnp.dot(h.astype(jnp.bfloat16), w2_ref[...],
                            preferred_element_type=jnp.float32)

    @pl.when(f == pl.num_programs(1) - 1)
    def _finalize():
        # post-norm: residual is the FFN input itself (f32)
        z = acc_ref[...] + b2_ref[...] + x_ref[...]
        mu = jnp.mean(z, axis=-1, keepdims=True)
        c = z - mu
        var = jnp.mean(c * c, axis=-1, keepdims=True)
        o_ref[...] = c * jax.lax.rsqrt(var + eps) * g_ref[...] + beta_ref[...]


def ffn_residual_layernorm(x, w1_bf16, b1, w2_bf16, b2, gamma, beta, *,
                           eps, vmem_limit):
    n, d_model = x.shape
    d_ff = w1_bf16.shape[1]
    tm = _pick_tile(n, 512, 8)
    resident = (2 * d_model * d_ff * 2           # w1 + w2 bf16 (single-buffered)
                + 2 * 2 * tm * d_model * 4       # x + out tiles (double-buffered)
                + tm * d_model * 4               # acc
                + tm * d_ff * (4 + 2))           # h f32 + h bf16 temporaries
    tf = d_ff if resident <= (vmem_limit * 4) // 5 else _pick_tile(d_ff, 512, 128)
    grid = (n // tm, d_ff // tf)
    row_spec = pl.BlockSpec((tm, d_model), lambda i, f: (i, 0))
    vec_spec = pl.BlockSpec((1, d_model), lambda i, f: (0, 0))
    return pl.pallas_call(
        functools.partial(_ffn_res_ln_kernel, eps=eps),
        grid=grid,
        in_specs=[row_spec,
                  pl.BlockSpec((d_model, tf), lambda i, f: (0, f)),
                  pl.BlockSpec((1, tf), lambda i, f: (0, f)),
                  pl.BlockSpec((tf, d_model), lambda i, f: (f, 0)),
                  vec_spec, vec_spec, vec_spec],
        out_specs=row_spec,
        out_shape=jax.ShapeDtypeStruct((n, d_model), jnp.float32),
        scratch_shapes=[pltpu.VMEM((tm, d_model), jnp.float32)],
        compiler_params=_compiler_params(("parallel", "arbitrary"), vmem_limit),
    )(x, w1_bf16, b1.reshape(1, -1), w2_bf16, b2.reshape(1, -1),
      gamma.reshape(1, -1), beta.reshape(1, -1))


# --------------------------- full forward pass ------------------------------

def transformer_encoder_layer(src, params, nhead):
    """src: (T, B, D) -> (out (T, B, D), 0)   [src_mask=None path]"""
    t, b, d = src.shape
    assert d % nhead == 0
    hd = d // nhead
    scale = float(hd) ** (-0.5)
    vmem_limit = _vmem_limit_bytes()

    # (T, B, D) -> (B, T, D) -> (B*T, D): batch-major rows so the attention
    # kernel windows lane-dense (tile, D) blocks per batch.
    x = src.transpose(1, 0, 2).reshape(b * t, d)

    # Fold the 1/sqrt(head_dim) query scaling into the fused QKV weight/bias
    # and cast all matmul weights to bf16 once here (weight-sized ops).
    qscale = jnp.concatenate([jnp.full((d,), scale, jnp.float32),
                              jnp.ones((2 * d,), jnp.float32)])
    wqkv = (params["wqkv"] * qscale[None, :]).astype(jnp.bfloat16)
    bqkv = params["bqkv"] * qscale
    wo = params["wo"].astype(jnp.bfloat16)
    w1 = params["w1"].astype(jnp.bfloat16)
    w2 = params["w2"].astype(jnp.bfloat16)

    q, k, v = qkv_projection(x, wqkv, bqkv, d_model=d, vmem_limit=vmem_limit)
    attn = multihead_attention(q, k, v, nhead=nhead, seq_len=t,
                               vmem_limit=vmem_limit)

    # out-proj + dropout1(identity) + residual + LayerNorm1 (fused epilogue)
    y = linear_residual_layernorm(attn, wo, params["bo"], x,
                                  params["ln1_g"], params["ln1_b"],
                                  eps=1e-5, vmem_limit=vmem_limit)

    # linear1 + GELU + dropout(identity) + linear2 + dropout2(identity)
    # + residual + LayerNorm2, all fused in one kernel
    out = ffn_residual_layernorm(y, w1, params["b1"], w2, params["b2"],
                                 params["ln2_g"], params["ln2_b"],
                                 eps=1e-5, vmem_limit=vmem_limit)

    return out.reshape(b, t, d).transpose(1, 0, 2), 0


# -------------------------- pure-JAX reference ------------------------------

def _layernorm_ref(z, g, bvec, eps=1e-5):
    mu = jnp.mean(z, axis=-1, keepdims=True)
    c = z - mu
    var = jnp.mean(c * c, axis=-1, keepdims=True)
    return c * jax.lax.rsqrt(var + eps) * g + bvec


def reference_forward(src, params, nhead):
    t, b, d = src.shape
    hd = d // nhead
    scale = float(hd) ** (-0.5)

    qkv = src @ params["wqkv"] + params["bqkv"]
    q, k, v = qkv[..., :d], qkv[..., d:2 * d], qkv[..., 2 * d:]
    q = q * scale

    def heads(z):
        return z.reshape(t, b * nhead, hd).transpose(1, 0, 2)

    q, k, v = heads(q), heads(k), heads(v)
    s = q @ jnp.swapaxes(k, 1, 2)
    p = jax.nn.softmax(s, axis=-1)
    o = (p @ v).transpose(1, 0, 2).reshape(t, b, d)
    attn = o @ params["wo"] + params["bo"]

    x = _layernorm_ref(src + attn, params["ln1_g"], params["ln1_b"])
    h = x @ params["w1"] + params["b1"]
    h = 0.5 * h * (1.0 + jax.lax.erf(h * _INV_SQRT2))
    h = h @ params["w2"] + params["b2"]
    return _layernorm_ref(x + h, params["ln2_g"], params["ln2_b"])


# ------------------------------ param init ----------------------------------

def init_params(key, d_model, dim_feedforward):
    ks = jax.random.split(key, 7)

    def xavier(k, fan_in, fan_out):
        lim = (6.0 / (fan_in + fan_out)) ** 0.5
        return jax.random.uniform(k, (fan_in, fan_out), jnp.float32, -lim, lim)

    def torch_w(k, fan_in, fan_out):
        lim = (1.0 / fan_in) ** 0.5
        return jax.random.uniform(k, (fan_in, fan_out), jnp.float32, -lim, lim)

    def torch_b(k, fan_in, fan_out):
        lim = (1.0 / fan_in) ** 0.5
        return jax.random.uniform(k, (fan_out,), jnp.float32, -lim, lim)

    return {
        # attention: qkv weight xavier-uniform, qkv/o biases zero (matches _reset_parameters)
        "wqkv": xavier(ks[0], d_model, 3 * d_model),
        "bqkv": jnp.zeros((3 * d_model,), jnp.float32),
        "wo": torch_w(ks[1], d_model, d_model),
        "bo": jnp.zeros((d_model,), jnp.float32),
        # feed-forward (torch nn.Linear default init)
        "w1": torch_w(ks[2], d_model, dim_feedforward),
        "b1": torch_b(ks[3], d_model, dim_feedforward),
        "w2": torch_w(ks[4], dim_feedforward, d_model),
        "b2": torch_b(ks[5], dim_feedforward, d_model),
        # layer norms
        "ln1_g": jnp.ones((d_model,), jnp.float32),
        "ln1_b": jnp.zeros((d_model,), jnp.float32),
        "ln2_g": jnp.ones((d_model,), jnp.float32),
        "ln2_b": jnp.zeros((d_model,), jnp.float32),
    }


# --------------------------------- main --------------------------------------

if __name__ == "__main__":
    T, B, D = 8, 2, 32          # (seq_len, batch, d_model)
    NHEAD = 4
    FFN = 64

    key = jax.random.PRNGKey(0)
    k_src, k_par = jax.random.split(key)
    src = jax.random.normal(k_src, (T, B, D), dtype=jnp.float32)
    params = init_params(k_par, D, FFN)

    out, _zero = transformer_encoder_layer(src, params, NHEAD)
    out = jax.block_until_ready(out)

    assert out.shape == (T, B, D)
    assert bool(jnp.all(jnp.isfinite(out)))

    with jax.default_matmul_precision("highest"):
        ref = reference_forward(src, params, NHEAD)
    max_err = float(jnp.max(jnp.abs(out - ref)))
    # bf16 MXU operands (with f32 accumulation / softmax / LayerNorm) deviate
    # from the f32 reference at the ~1e-2 level.
    assert bool(jnp.allclose(out, ref, rtol=5e-2, atol=5e-2)), max_err

    print("KERNEL_OK")
</pallas_src>

<mosaic_0001>
module attributes {stable_mosaic.version = 11 : i64} {
  func.func @_qkv_kernel(%arg0: i32, %arg1: i32, %arg2: memref<16x32xf32, #tpu.memory_space<vmem>>, %arg3: memref<32x96xbf16, #tpu.memory_space<vmem>>, %arg4: memref<1x96xf32, #tpu.memory_space<vmem>>, %arg5: memref<16x32xf32, #tpu.memory_space<vmem>>, %arg6: memref<16x32xf32, #tpu.memory_space<vmem>>, %arg7: memref<16x32xf32, #tpu.memory_space<vmem>>, %arg8: memref<16x96xf32, #tpu.memory_space<vmem>>) attributes {dimension_semantics = [#tpu.dimension_semantics<parallel>, #tpu.dimension_semantics<arbitrary>], iteration_bounds = array<i64: 1, 1>, scalar_prefetch = 0 : i64, scratch_operands = 1 : i64, tpu.core_type = #tpu.core_type<tc>, window_params = [{transform_indices = @transform_0, window_bounds = array<i64: 16, 32>}, {transform_indices = @transform_1, window_bounds = array<i64: 32, 96>}, {pipeline_mode = #tpu.pipeline_mode<synchronous>, transform_indices = @transform_2, window_bounds = array<i64: 1, 96>}, {transform_indices = @transform_3, window_bounds = array<i64: 16, 32>}, {transform_indices = @transform_4, window_bounds = array<i64: 16, 32>}, {transform_indices = @transform_5, window_bounds = array<i64: 16, 32>}]} {
    %c0_i32 = arith.constant 0 : i32
    %0 = arith.cmpi eq, %arg1, %c0_i32 : i32
    %1 = arith.extui %0 : i1 to i32
    %c0_i32_0 = arith.constant 0 : i32
    %2 = arith.cmpi ne, %1, %c0_i32_0 : i32
    scf.if %2 {
      %cst_10 = arith.constant 0.000000e+00 : f32
      %13 = vector.broadcast %cst_10 : f32 to vector<16x96xf32>
      %c0_11 = arith.constant 0 : index
      %c0_12 = arith.constant 0 : index
      %14 = vector.load %arg8[%c0_11, %c0_12] : memref<16x96xf32, #tpu.memory_space<vmem>>, vector<16x96xf32>
      tpu.vector_store %arg8[%c0_11, %c0_12], %13 {strides = array<i32>} : memref<16x96xf32, #tpu.memory_space<vmem>>, vector<16x96xf32>,
    } else {
    }
    %c0 = arith.constant 0 : index
    %c0_1 = arith.constant 0 : index
    %3 = vector.load %arg2[%c0, %c0_1] : memref<16x32xf32, #tpu.memory_space<vmem>>, vector<16x32xf32>
    %4 = arith.truncf %3 : vector<16x32xf32> to vector<16x32xbf16>
    %c0_2 = arith.constant 0 : index
    %c0_3 = arith.constant 0 : index
    %5 = vector.load %arg8[%c0_2, %c0_3] : memref<16x96xf32, #tpu.memory_space<vmem>>, vector<16x96xf32>
    %c0_4 = arith.constant 0 : index
    %c0_5 = arith.constant 0 : index
    %6 = vector.load %arg3[%c0_4, %c0_5] : memref<32x96xbf16, #tpu.memory_space<vmem>>, vector<32x96xbf16>
    %cst = arith.constant dense<0.000000e+00> : vector<16x96xf32>
    %7 = tpu.matmul %4, %6, %cst {dimension_numbers = #tpu.dot_dimension_numbers<[1], [0], [0], [1], [0, 0, 1, 1], [], []>} : vector<16x32xbf16>, vector<32x96xbf16>, vector<16x96xf32> -> vector<16x96xf32>
    %8 = arith.addf %5, %7 : vector<16x96xf32>
    %c0_6 = arith.constant 0 : index
    %c0_7 = arith.constant 0 : index
    %9 = vector.load %arg8[%c0_6, %c0_7] : memref<16x96xf32, #tpu.memory_space<vmem>>, vector<16x96xf32>
    tpu.vector_store %arg8[%c0_6, %c0_7], %8 {strides = array<i32>} : memref<16x96xf32, #tpu.memory_space<vmem>>, vector<16x96xf32>,
    %c0_i32_8 = arith.constant 0 : i32
    %10 = arith.cmpi eq, %arg1, %c0_i32_8 : i32
    %11 = arith.extui %10 : i1 to i32
    %c0_i32_9 = arith.constant 0 : i32
    %12 = arith.cmpi ne, %11, %c0_i32_9 : i32
    scf.if %12 {
      %c0_10 = arith.constant 0 : index
      %c0_11 = arith.constant 0 : index
      %13 = vector.load %arg8[%c0_10, %c0_11] : memref<16x96xf32, #tpu.memory_space<vmem>>, vector<16x96xf32>
      %c0_12 = arith.constant 0 : index
      %c0_13 = arith.constant 0 : index
      %14 = vector.load %arg4[%c0_12, %c0_13] : memref<1x96xf32, #tpu.memory_space<vmem>>, vector<1x96xf32>
      %15 = vector.broadcast %14 : vector<1x96xf32> to vector<16x96xf32>
      %16 = arith.addf %13, %15 : vector<16x96xf32>
      %17 = vector.extract_strided_slice %16 {offsets = [0, 0], sizes = [16, 32], strides = [1, 1]} : vector<16x96xf32> to vector<16x32xf32>
      %c0_14 = arith.constant 0 : index
      %c0_15 = arith.constant 0 : index
      %18 = vector.load %arg5[%c0_14, %c0_15] : memref<16x32xf32, #tpu.memory_space<vmem>>, vector<16x32xf32>
      tpu.vector_store %arg5[%c0_14, %c0_15], %17 {strides = array<i32>} : memref<16x32xf32, #tpu.memory_space<vmem>>, vector<16x32xf32>,
      %19 = vector.extract_strided_slice %16 {offsets = [0, 32], sizes = [16, 32], strides = [1, 1]} : vector<16x96xf32> to vector<16x32xf32>
      %c0_16 = arith.constant 0 : index
      %c0_17 = arith.constant 0 : index
      %20 = vector.load %arg6[%c0_16, %c0_17] : memref<16x32xf32, #tpu.memory_space<vmem>>, vector<16x32xf32>
      tpu.vector_store %arg6[%c0_16, %c0_17], %19 {strides = array<i32>} : memref<16x32xf32, #tpu.memory_space<vmem>>, vector<16x32xf32>,
      %21 = vector.extract_strided_slice %16 {offsets = [0, 64], sizes = [16, 32], strides = [1, 1]} : vector<16x96xf32> to vector<16x32xf32>
      %c0_18 = arith.constant 0 : index
      %c0_19 = arith.constant 0 : index
      %22 = vector.load %arg7[%c0_18, %c0_19] : memref<16x32xf32, #tpu.memory_space<vmem>>, vector<16x32xf32>
      tpu.vector_store %arg7[%c0_18, %c0_19], %21 {strides = array<i32>} : memref<16x32xf32, #tpu.memory_space<vmem>>, vector<16x32xf32>,
    } else {
    }
    return
  }
  func.func @transform_0(%arg0: i32, %arg1: i32) -> (i32, i32) {
    %c0_i32 = arith.constant 0 : i32
    return %arg0, %arg1 : i32, i32
  }
  func.func @transform_1(%arg0: i32, %arg1: i32) -> (i32, i32) {
    %c0_i32 = arith.constant 0 : i32
    %c0_i32_0 = arith.constant 0 : i32
    return %arg1, %c0_i32 : i32, i32
  }
  func.func @transform_2(%arg0: i32, %arg1: i32) -> (i32, i32) {
    %c0_i32 = arith.constant 0 : i32
    %c0_i32_0 = arith.constant 0 : i32
    %c0_i32_1 = arith.constant 0 : i32
    return %c0_i32, %c0_i32_0 : i32, i32
  }
  func.func @transform_3(%arg0: i32, %arg1: i32) -> (i32, i32) {
    %c0_i32 = arith.constant 0 : i32
    %c0_i32_0 = arith.constant 0 : i32
    return %arg0, %c0_i32 : i32, i32
  }
  func.func @transform_4(%arg0: i32, %arg1: i32) -> (i32, i32) {
    %c0_i32 = arith.constant 0 : i32
    %c0_i32_0 = arith.constant 0 : i32
    return %arg0, %c0_i32 : i32, i32
  }
  func.func @transform_5(%arg0: i32, %arg1: i32) -> (i32, i32) {
    %c0_i32 = arith.constant 0 : i32
    %c0_i32_0 = arith.constant 0 : i32
    return %arg0, %c0_i32 : i32, i32
  }
}

</mosaic_0001>

<bundles_post_ra>
// kernel: tpu_custom_call.1
= control target key start
LH: loop header
LB: loop body
LE: loop exit
PB: predicated region body
PF: predicated region fallthrough
CT: control target
= control target key end

     0   :  { %11 = vsyncpa [#allocation4], 0  ;;  %s495_s0 = inlined_call_operand.hbm [shape: f32[16,32], index: 0, kind: input, shape index: {}]   ;;  %s496_s1 = inlined_call_operand.hbm [shape: bf16[32,96], index: 1, kind: input, shape index: {}]   ;;  %s497_s2 = inlined_call_operand.vmem [shape: f32[1,96], index: 2, kind: input, shape index: {}]   ;;  %s498_s3 = inlined_call_operand.hbm [shape: f32[16,32], index: 3, kind: output, shape index: {0}]   ;;  %s499_s4 = inlined_call_operand.hbm [shape: f32[16,32], index: 4, kind: output, shape index: {1}]   ;;  %s500_s5 = inlined_call_operand.hbm [shape: f32[16,32], index: 5, kind: output, shape index: {2}]  }
   0x1   :  { %12 = vsyncpa [#allocation7], 0 }
   0x2   :  { %13 = vsyncpa [#allocation5], 0 }
   0x3   :  { %14 = vsyncpa [#allocation10], 0  ;;  %s356_s18 = smov [#allocation3]   ;;  %s238_s22 = scalar_lea.hbm %s495_s0, 256 }
   0x4   :  { %s20_s19 = sshll.u32 %s356_s18, 4  ;;  %p239_p0 = scmp.ne.s32.totalorder %s495_s0, %s238_s22  ;;  %s21_s19 = int_to_ptr.vmem [resolvable:$true] %s20_s19 }
   0x5   :  { %p242_p1 = scmp.lt.u32.totalorder %s238_s22, %s495_s0 }
   0x7   :  { %p244_p2 = pnand %p242_p1, %p239_p0 }
   0x9   :  { %247 = shalt.err (!%p244_p2)
}
   0xa   :  { %s248_s27 = scalar_lea.vmem %s21_s19, 256  ;;  %p253_p4 = scmp.lt.s32.totalorder %s21_s19, %s21_s19 }
   0xb   :  { %p249_p3 = scmp.ne.s32.totalorder %s21_s19, %s248_s27  ;;  %p254_p5 = scmp.lt.s32.totalorder %s248_s27, %s248_s27 }
   0xd   :  { %p255_p6 = por %p254_p5, %p253_p4 }
   0xf   :  { %p256_p7 = pnand %p255_p6, %p249_p3 }
  0x11   :  { %259 = shalt.err (!%p256_p7)
}
  0x12   :  { %s357_s28 = smov 128   ;;  %s358_s29 = smov 8  }
  0x13   :  { %26 = dma.hbm_to_vmem [thread:$0]  %s495_s0, 256, %s21_s19, [#allocation4], %s357_s28, %s357_s28, %s358_s29  }
  0x14   :  { %s359_s7 = smov [#allocation6]   ;;  %s260_s11 = scalar_lea.hbm %s496_s1, 256 }
  0x15   :  { %s32_s8 = sshll.u32 %s359_s7, 4  ;;  %p261_p8 = scmp.ne.s32.totalorder %s496_s1, %s260_s11  ;;  %s33_s8 = int_to_ptr.vmem [resolvable:$true] %s32_s8 }
  0x16   :  { %p264_p9 = scmp.lt.u32.totalorder %s260_s11, %s496_s1 }
  0x18   :  { %p266_p10 = pnand %p264_p9, %p261_p8 }
  0x1a   :  { %269 = shalt.err (!%p266_p10)
}
  0x1b   :  { %s270_s16 = scalar_lea.vmem %s33_s8, 256  ;;  %p275_p12 = scmp.lt.s32.totalorder %s33_s8, %s33_s8 }
  0x1c   :  { %p271_p11 = scmp.ne.s32.totalorder %s33_s8, %s270_s16  ;;  %p276_p13 = scmp.lt.s32.totalorder %s270_s16, %s270_s16 }
  0x1e   :  { %p277_p0 = por %p276_p13, %p275_p12 }
  0x20   :  { %p278_p1 = pnand %p277_p0, %p271_p11 }
  0x22   :  { %281 = shalt.err (!%p278_p1)
}
  0x23   :  { %s360_s0 = smov 64   ;;  %s361_s17 = smov 4  }
  0x24   :  { %38 = dma.hbm_to_vmem [thread:$0]  %s496_s1, 256, %s33_s8, [#allocation7], %s360_s0, %s360_s0, %s361_s17  }
  0x25   :  { %348 = dma.done.wait [#allocation4], 256  }
  0x26   :  { %349 = vsyncadd [#allocation4], 4294967040 }
  0x27   :  { %350 = dma.done.wait [#allocation7], 256  }
  0x28   :  { %351 = vsyncadd [#allocation7], 4294967040  ;;  %vm52_vm0 = vcmask 785408   ;;  %v362_v0 = vmov 0.0   ;;  %vm363_vm1 = vmmov 0   ;;  %v236_v1 = vld [vmem:[#allocation6] sm:$0xff]  }
  0x29   :  { %53 = vst.msk [vmem:[#allocation2] sm:$0xff] %vm52_vm0, %v362_v0  ;;  %54 = vst.msk [vmem:[#allocation2 + $0x8] sm:$0xff] %vm52_vm0, %v362_v0  ;;  %216 = vmatprep.subr.bf16.mxu0 %v362_v0  ;;  %220 = vmatprep.mubr.msk.bf16.mxu0 %vm363_vm1, %v362_v0  ;;  %v237_v2 = vld [vmem:[#allocation6 + $0x8] sm:$0xff]   ;;  %v55_v3 = vld [vmem:[#allocation3] sm:$0xff]  ;;  %vm76_vm2 = vcmask 261120   ;;  %s364_s21 = smov [#allocation8]  }
  0x2a   :  { %217 = vmatpush3.bf16.msra.mxu0 %v236_v1  ;;  %v56_v4 = vld [vmem:[#allocation3 + $0x8] sm:$0xff]  ;;  %v212_v14 = vld [vmem:[%s497_s2] ss:$0 sm:$0xff]  ;;  %s165_s22 = sshll.u32 %s364_s21, 4  ;;  %s365_s23 = smov 96   ;;  %s166_s22 = int_to_ptr.vmem [resolvable:$true] %s165_s22 }
  0x2b   :  { %218 = vmatprep.subr.bf16.mxu0 %v362_v0  ;;  %v57_v5 = vpack.c.bf16 %v56_v4, %v55_v3  ;;  %s282_s24 = scalar_lea.vmem %s166_s22, 256  ;;  %p287_p3 = scmp.lt.s32.totalorder %s166_s22, %s166_s22 }
  0x2c   :  { %p283_p2 = scmp.ne.s32.totalorder %s166_s22, %s282_s24  ;;  %p288_p4 = scmp.lt.s32.totalorder %s282_s24, %s282_s24 }
  0x2e   :  { %219 = vmatpush3.bf16.msra.mxu0 %v237_v2  ;;  %p289_p5 = por %p288_p4, %p287_p3 }
  0x30   :  { %v58_v6 = vld [vmem:[#allocation2] sm:$0xff]  ;;  %v59_v8 = vld [vmem:[#allocation2 + $0x8] sm:$0xff]  ;;  %p290_p6 = pnand %p289_p5, %p283_p2 }
  0x31   :  { %221 = vmatmul.mubr.msk.bf16.vlgmr.msra.gmra.mrb[0].mxu0 %vm76_vm2, %v57_v5 }
 0x104   :  { %v114_v7 = vpop.f32.mrb[0].mxu0 }
 0x105   :  { %v121_v9 = vadd.f32 %v114_v7, %v58_v6  ;;  %v222_v10 = vpop.f32.mrb[1].mxu0 }
 0x106   :  { %v117_v11 = vpop.f32.mrb[2].mxu0 }
 0x107   :  { %124 = vst.msk [vmem:[#allocation2] sm:$0xff] %vm52_vm0, %v121_v9  ;;  %v122_v12 = vadd.f32 %v117_v11, %v59_v8  ;;  %v223_v13 = vpop.f32.mrb[3].mxu0 }
 0x109   :  { %125 = vst.msk [vmem:[#allocation2 + $0x8] sm:$0xff] %vm52_vm0, %v122_v12 }
 0x10e   :  { %v129_v15 = vld [vmem:[#allocation2] sm:$0xff] }
 0x10f   :  { %v138_v16 = vadd.f32 %v212_v14, %v129_v15 }
 0x110   :  { %v130_v17 = vld [vmem:[#allocation2 + $0x8] sm:$0xff] }
 0x111   :  { %152 = vrot.lane.b32.xlu1 %v138_v16, %s360_s0  ;;  %140 = vst.msk [vmem:[#allocation8] sm:$0xff] %vm76_vm2, %v138_v16  ;;  %144 = vrot.lane.b32.xlu0 %v138_v16, %s365_s23  ;;  %v139_v18 = vadd.f32 %v212_v14, %v130_v17 }
 0x113   :  { %141 = vst.msk [vmem:[#allocation8 + $0x8] sm:$0xff] %vm76_vm2, %v139_v18 }
 0x114   :  { %293 = shalt.err (!%p290_p6)
}
 0x115   :  { %s294_s26 = scalar_lea.hbm %s498_s3, 256 }
 0x116   :  { %p295_p7 = scmp.ne.s32.totalorder %s498_s3, %s294_s26  ;;  %p298_p8 = scmp.lt.u32.totalorder %s294_s26, %s498_s3 }
 0x118   :  { %p300_p9 = pnand %p298_p8, %p295_p7 }
 0x11a   :  { %303 = shalt.err (!%p300_p9)
}
 0x11b   :  { %171 = dma.vmem_to_hbm [thread:$0]  %s166_s22, 256, %s498_s3, [#allocation5], %s357_s28, %s357_s28, %s358_s29  }
 0x11c   :  { %154 = vrot.lane.b32.xlu1 %v139_v18, %s360_s0  ;;  %146 = vrot.lane.b32.xlu0 %v139_v18, %s365_s23  ;;  %s366_s10 = smov [#allocation9]   ;;  %s367_s12 = smov [#allocation11]  }
 0x11d   :  { %s177_s11 = sshll.u32 %s366_s10, 4  ;;  %s189_s13 = sshll.u32 %s367_s12, 4  ;;  %s178_s11 = int_to_ptr.vmem [resolvable:$true] %s177_s11  ;;  %s456_s13 = int_to_ptr.vmem [resolvable:$true] %s189_s13 }
 0x11e   :  { %s304_s3 = scalar_lea.vmem %s178_s11, 256  ;;  %p309_p11 = scmp.lt.s32.totalorder %s178_s11, %s178_s11 }
 0x11f   :  { %p305_p10 = scmp.ne.s32.totalorder %s178_s11, %s304_s3  ;;  %p310_p12 = scmp.lt.s32.totalorder %s304_s3, %s304_s3 }
 0x121   :  { %p311_p13 = por %p310_p12, %p309_p11 }
 0x123   :  { %p312_p0 = pnand %p311_p13, %p305_p10 }
 0x183   :  { %v153_v19 = vpop.permute.xlu1 %152  ;;  %v145_v20 = vpop.permute.xlu0 %144 }
 0x184   :  { %158 = vst.msk [vmem:[#allocation11] sm:$0xff] %vm76_vm2, %v153_v19  ;;  %150 = vst.msk [vmem:[#allocation9] sm:$0xff] %vm76_vm2, %v145_v20 }
 0x18e   :  { %v155_v21 = vpop.permute.xlu1 %154  ;;  %v147_v22 = vpop.permute.xlu0 %146 }
 0x18f   :  { %159 = vst.msk [vmem:[#allocation11 + $0x8] sm:$0xff] %vm76_vm2, %v155_v21  ;;  %151 = vst.msk [vmem:[#allocation9 + $0x8] sm:$0xff] %vm76_vm2, %v147_v22 }
 0x190   :  { %315 = shalt.err (!%p312_p0)
}
 0x191   :  { %s316_s16 = scalar_lea.hbm %s499_s4, 256 }
 0x192   :  { %p317_p1 = scmp.ne.s32.totalorder %s499_s4, %s316_s16  ;;  %p320_p2 = scmp.lt.u32.totalorder %s316_s16, %s499_s4 }
 0x194   :  { %p322_p3 = pnand %p320_p2, %p317_p1 }
 0x196   :  { %325 = shalt.err (!%p322_p3)
}
 0x197   :  { %183 = dma.vmem_to_hbm [thread:$0]  %s178_s11, 256, %s499_s4, [#allocation10], %s357_s28, %s357_s28, %s358_s29  }
 0x198   :  { %s326_s21 = scalar_lea.vmem %s456_s13, 256  ;;  %p331_p5 = scmp.lt.s32.totalorder %s456_s13, %s456_s13 }
 0x199   :  { %p327_p4 = scmp.ne.s32.totalorder %s456_s13, %s326_s21  ;;  %p332_p6 = scmp.lt.s32.totalorder %s326_s21, %s326_s21 }
 0x19b   :  { %p333_p7 = por %p332_p6, %p331_p5 }
 0x19d   :  { %p334_p8 = pnand %p333_p7, %p327_p4 }
 0x19f   :  { %337 = shalt.err (!%p334_p8)
}
 0x1a0   :  { %s338_s24 = scalar_lea.hbm %s500_s5, 256 }
 0x1a1   :  { %p339_p9 = scmp.ne.s32.totalorder %s500_s5, %s338_s24  ;;  %p342_p10 = scmp.lt.u32.totalorder %s338_s24, %s500_s5 }
 0x1a3   :  { %p344_p11 = pnand %p342_p10, %p339_p9 }
 0x1a5   :  { %347 = shalt.err (!%p344_p11)
}
 0x1a6   :  { %195 = dma.vmem_to_hbm [thread:$0]  %s456_s13, 256, %s500_s5, [#allocation10], %s357_s28, %s357_s28, %s358_s29  }
 0x1a7   :  { %352 = dma.done.wait [#allocation5], 256  }
 0x1a8   :  { %353 = vsyncadd [#allocation5], 4294967040 }
 0x1a9   :  { %354 = dma.done.wait [#allocation10], 512  }
 0x1aa   :  { %355 = vsyncadd [#allocation10], 4294966784 }
 0x1ab   :  { %205 = vsyncpa [#allocation4], 1 }
 0x1ac   :  { %206 = vsyncpa [#allocation7], 1 }
 0x1ad   :  { %207 = vsyncpa [#allocation5], 1 }
 0x1ae   :  { %208 = vsyncpa [#allocation10], 1 }

</bundles_post_ra>
